<compile_context>
chip_gen: v7x
topology: tpu7x:2x2x1
jax: 0.10.0
libtpu: 0.0.40
codegen_flags: <defaults>
</compile_context>

<pallas_src>
import functools

import jax
import jax.numpy as jnp
import numpy as np
from jax.experimental import pallas as pl
from jax.experimental.pallas import tpu as pltpu


_MAX_TILE_T = 4096   # cap on the time tile (rows); review recommends 2048-4096
_SPLIT_T = 2048      # single-tile inputs >= this are split into 2 tiles (v7x 2 TCs)


def _greedy_ctc_kernel(e_ref, halo_ref, out_ref, *, blank: int, halo_rows: int):
    """One time-tile of greedy CTC decoding.

    e_ref    : (TILE_T, L) logits for this tile (native dtype)
    halo_ref : (HR, L)     trailing rows of the previous tile; its last row is
                           global row tile_start - 1 (unused on tile 0)
    out_ref  : (TILE_T, 1) int32 packed result: argmax index, or -1 if the step
                           is removed by unique_consecutive / blank removal
    """
    # Native-dtype value path (f32 / bf16): comparisons are exact, no upcast.
    e = e_ref[...]                                            # (T, L)
    t, l = e.shape

    # First-index argmax over labels, NaN-safe (a NaN row yields the first NaN
    # position, matching torch, and the index is always in [0, L)).
    row_max = jnp.max(e, axis=-1, keepdims=True)              # (T, 1)
    col_ids = jax.lax.broadcasted_iota(jnp.int32, (t, l), 1)
    cand = (e >= row_max) | jnp.isnan(e)
    idx = jnp.min(jnp.where(cand, col_ids, l), axis=-1, keepdims=True)   # (T,1)

    # Only the LAST halo row (global row tile_start - 1) is needed: take it
    # with a free static slice and run a single (1, L) argmax.
    h = halo_ref[pl.ds(halo_rows - 1, 1), :]                  # (1, L)
    h_max = jnp.max(h, axis=-1, keepdims=True)
    h_ids = jax.lax.broadcasted_iota(jnp.int32, (1, l), 1)
    h_cand = (h >= h_max) | jnp.isnan(h)
    prev0 = jnp.min(jnp.where(h_cand, h_ids, l), axis=-1, keepdims=True)  # (1,1)

    # unique_consecutive: a step survives iff its index differs from the
    # previous step's index.  Within the tile the previous index is a sublane
    # roll (forward shift only — see partial-tile note above); for row 0 it
    # comes from the halo.  Global row 0 is always "new".
    pos = jax.lax.broadcasted_iota(jnp.int32, (t, 1), 0)
    prev = jnp.where(pos == 0, prev0, pltpu.roll(idx, shift=1, axis=0))
    first_global = (pl.program_id(0) == 0) & (pos == 0)
    keep = (first_global | (idx != prev)) & (idx != blank)

    out_ref[...] = jnp.where(keep, idx, -1).astype(jnp.int32)


def _round_up(x: int, m: int) -> int:
    return ((x + m - 1) // m) * m


def _vmem_limit_bytes() -> int:
    """Generation-aware VMEM limit: ~3/4 of physical VMEM, 32..100 MiB."""
    phys = 64 * 1024 * 1024               # fallback = smallest per-TC VMEM (v7x)
    try:
        cap = int(pltpu.get_tpu_info().vmem_capacity_bytes)
        if cap > 0:
            phys = cap
    except Exception:
        pass
    # v5e/v6e (128 MiB) -> 96 MiB; v7x (64 MiB per TC) -> 48 MiB
    return max(32 * 1024 * 1024, min((phys * 3) // 4, 100 * 1024 * 1024))


def _pick_tile_t(t: int, l: int, itemsize: int, halo_rows: int,
                 vmem_limit: int, max_tile: int) -> int:
    """Largest time-tile (multiple of halo_rows) that fits the VMEM limit."""
    lanes = _round_up(max(l, 1), 128)        # lane padding of the label axis
    in_row = lanes * max(itemsize, 1)        # VMEM bytes per input row
    work_row = lanes * 4 * 4                 # ~4 live f32-wide temporaries / row
    out_row = 128 * 4                        # (tile_t, 1) i32 block pads to a lane
    per_row = 2 * in_row + work_row + 2 * out_row   # input & output double-buffered
    usable = vmem_limit - 2 * halo_rows * in_row - (1 << 20)   # 1 MiB slack
    max_rows = max(halo_rows, usable // per_row)
    cap = min(max_tile, int(max_rows))
    if t <= cap:
        if t >= _SPLIT_T:
            # Two even tiles so the "parallel" grid axis shards across v7x's
            # 2 TensorCores; costs one extra ~0.35us step on 1-TC chips.
            return _round_up(pl.cdiv(t, 2), halo_rows)
        return t                             # one full-extent block (always legal)
    return max(halo_rows, (cap // halo_rows) * halo_rows)


def greedy_ctc_decode_packed(emission: jax.Array, blank: int = 0,
                             *, max_tile_t: int = _MAX_TILE_T) -> jax.Array:
    """Run the Pallas kernel.

    Returns a (T, 1) int32 array: per-step argmax index, or -1 where the step
    is dropped by unique_consecutive + blank removal.
    """
    t, l = emission.shape
    itemsize = emission.dtype.itemsize
    # dtype-aware halo height: 8 rows/vreg f32, 16 bf16, 32 int8 (native tiles)
    native_rows = 8 * max(1, 4 // max(itemsize, 1))
    halo_rows = min(native_rows, t)

    vmem_limit = _vmem_limit_bytes()
    tile_t = _pick_tile_t(t, l, itemsize, halo_rows, vmem_limit, max_tile_t)
    blocks_per_tile = max(tile_t // halo_rows, 1)
    num_tiles = pl.cdiv(t, tile_t)

    kernel = functools.partial(_greedy_ctc_kernel, blank=blank,
                               halo_rows=halo_rows)
    grid_spec = pltpu.PrefetchScalarGridSpec(
        num_scalar_prefetch=0,
        grid=(num_tiles,),
        in_specs=[
            # main tile of this grid step
            pl.BlockSpec((tile_t, l), lambda i: (i, 0)),
            # halo: trailing rows of the previous tile (clamped at 0 for tile 0)
            pl.BlockSpec((halo_rows, l),
                         lambda i: (jnp.maximum(i * blocks_per_tile - 1, 0), 0)),
        ],
        out_specs=pl.BlockSpec((tile_t, 1), lambda i: (i, 0)),
    )
    return pl.pallas_call(
        kernel,
        out_shape=jax.ShapeDtypeStruct((t, 1), jnp.int32),
        grid_spec=grid_spec,
        compiler_params=pltpu.CompilerParams(
            dimension_semantics=("parallel",),   # halo removes the serial carry
            vmem_limit_bytes=vmem_limit,         # same number the tile was sized to
        ),
    )(emission, emission)


def _packed_to_transcript(packed: np.ndarray, labels) -> str:
    return "".join(labels[int(i)] for i in packed if i >= 0)


class GreedyCTCDecoder:
    """JAX/Pallas port of the PyTorch GreedyCTCDecoder module."""

    def __init__(self, labels, blank: int = 0):
        self.labels = labels
        self.blank = blank

    def __call__(self, emission: jax.Array) -> str:
        packed = greedy_ctc_decode_packed(emission, blank=self.blank)
        packed = jax.device_get(jax.block_until_ready(packed))[:, 0]
        # host-side glue: join surviving indices into the transcript string
        return _packed_to_transcript(packed, self.labels)


def _reference_transcript(emission_np: np.ndarray, labels, blank: int) -> str:
    idx = np.argmax(emission_np, axis=-1)
    out, prev = [], None
    for i in idx:
        i = int(i)
        if i != prev and i != blank:
            out.append(labels[i])
        prev = i
    return "".join(out)


if __name__ == "__main__":
    # small shapes consistent with the module: num_seq=8, num_label=32
    num_seq, num_label = 8, 32
    labels = "-" + "abcdefghijklmnopqrstuvwxyz" + " '.,?"   # 32 symbols, blank='-'
    assert len(labels) == num_label

    key = jax.random.PRNGKey(0)
    emission = jax.random.normal(key, (num_seq, num_label), dtype=jnp.float32)

    decoder = GreedyCTCDecoder(labels, blank=0)

    # run the kernel once and block on the device result
    packed = greedy_ctc_decode_packed(emission, blank=0)
    jax.block_until_ready(packed)

    transcript = decoder(emission)
    ref = _reference_transcript(np.asarray(jax.device_get(emission)), labels, 0)
    assert transcript == ref, (transcript, ref)

    # bf16 input, single large full-extent tile (new sizing path), 16-row halo
    t2 = 1000
    em2 = jax.random.normal(jax.random.PRNGKey(1), (t2, num_label),
                            dtype=jnp.bfloat16)
    tr2 = decoder(em2)
    em2_np = np.asarray(jax.device_get(em2)).astype(np.float32)
    ref2 = _reference_transcript(em2_np, labels, 0)
    assert tr2 == ref2, (tr2[:64], ref2[:64])

    # force the gridded / pipelined path at small shapes: multi-tile, partial
    # last tile, cross-tile halo
    t3 = 200
    em3 = jax.random.normal(jax.random.PRNGKey(2), (t3, num_label),
                            dtype=jnp.float32)
    packed3 = greedy_ctc_decode_packed(em3, blank=0, max_tile_t=64)
    packed3 = jax.device_get(jax.block_until_ready(packed3))[:, 0]
    tr3 = _packed_to_transcript(packed3, labels)
    ref3 = _reference_transcript(np.asarray(jax.device_get(em3)), labels, 0)
    assert tr3 == ref3, (tr3[:64], ref3[:64])

    print("KERNEL_OK")
</pallas_src>

<mosaic_0001>
module attributes {stable_mosaic.version = 11 : i64} {
  func.func @_greedy_ctc_kernel(%arg0: i32, %arg1: memref<8x32xf32, #tpu.memory_space<vmem>>, %arg2: memref<8x32xf32, #tpu.memory_space<vmem>>, %arg3: memref<8x1xi32, #tpu.memory_space<vmem>>) attributes {dimension_semantics = [#tpu.dimension_semantics<parallel>], iteration_bounds = array<i64: 1>, scalar_prefetch = 0 : i64, scratch_operands = 0 : i64, tpu.core_type = #tpu.core_type<tc>, window_params = [{transform_indices = @transform_0, window_bounds = array<i64: 8, 32>}, {transform_indices = @transform_1, window_bounds = array<i64: 8, 32>}, {transform_indices = @transform_2, window_bounds = array<i64: 8, 1>}]} {
    %c0 = arith.constant 0 : index
    %c0_0 = arith.constant 0 : index
    %0 = vector.load %arg1[%c0, %c0_0] : memref<8x32xf32, #tpu.memory_space<vmem>>, vector<8x32xf32>
    %cst = arith.constant dense<0xFF800000> : vector<8xf32>
    %1 = vector.multi_reduction <maximumf>, %0, %cst [1] : vector<8x32xf32> to vector<8xf32>
    %2 = vector.shape_cast %1 : vector<8xf32> to vector<8x1xf32>
    %3 = tpu.iota {dimensions = array<i32: 1>} : vector<8x32xi32>
    %4 = vector.broadcast %2 : vector<8x1xf32> to vector<8x32xf32>
    %5 = arith.cmpf oge, %0, %4 : vector<8x32xf32>
    %6 = arith.cmpf one, %0, %0 : vector<8x32xf32>
    %7 = arith.ori %5, %6 : vector<8x32xi1>
    %c32_i32 = arith.constant 32 : i32
    %8 = vector.broadcast %c32_i32 : i32 to vector<8x32xi32>
    %9 = arith.select %7, %3, %8 : vector<8x32xi1>, vector<8x32xi32>
    %cst_1 = arith.constant dense<2147483647> : vector<8xi32>
    %10 = vector.multi_reduction <minsi>, %9, %cst_1 [1] : vector<8x32xi32> to vector<8xi32>
    %11 = vector.shape_cast %10 : vector<8xi32> to vector<8x1xi32>
    %c7 = arith.constant 7 : index
    %c0_2 = arith.constant 0 : index
    %12 = vector.load %arg2[%c7, %c0_2] : memref<8x32xf32, #tpu.memory_space<vmem>>, vector<1x32xf32>
    %cst_3 = arith.constant dense<0xFF800000> : vector<1xf32>
    %13 = vector.multi_reduction <maximumf>, %12, %cst_3 [1] : vector<1x32xf32> to vector<1xf32>
    %14 = vector.shape_cast %13 : vector<1xf32> to vector<1x1xf32>
    %15 = tpu.iota {dimensions = array<i32: 1>} : vector<1x32xi32>
    %16 = vector.broadcast %14 : vector<1x1xf32> to vector<1x32xf32>
    %17 = arith.cmpf oge, %12, %16 : vector<1x32xf32>
    %18 = arith.cmpf one, %12, %12 : vector<1x32xf32>
    %19 = arith.ori %17, %18 : vector<1x32xi1>
    %c32_i32_4 = arith.constant 32 : i32
    %20 = vector.broadcast %c32_i32_4 : i32 to vector<1x32xi32>
    %21 = arith.select %19, %15, %20 : vector<1x32xi1>, vector<1x32xi32>
    %cst_5 = arith.constant dense<2147483647> : vector<1xi32>
    %22 = vector.multi_reduction <minsi>, %21, %cst_5 [1] : vector<1x32xi32> to vector<1xi32>
    %23 = vector.shape_cast %22 : vector<1xi32> to vector<1x1xi32>
    %24 = tpu.iota {dimensions = array<i32: 0>} : vector<8x1xi32>
    %c0_i32 = arith.constant 0 : i32
    %25 = vector.broadcast %c0_i32 : i32 to vector<8x1xi32>
    %26 = arith.cmpi eq, %24, %25 : vector<8x1xi32>
    %c1_i32 = arith.constant 1 : i32
    %27 = tpu.dynamic_rotate %11 by %c1_i32 dim 0 : vector<8x1xi32>, i32 -> vector<8x1xi32>
    %28 = vector.shape_cast %23 : vector<1x1xi32> to vector<1x1xi32>
    %29 = vector.broadcast %28 : vector<1x1xi32> to vector<8x1xi32>
    %30 = arith.select %26, %29, %27 : vector<8x1xi1>, vector<8x1xi32>
    %c0_i32_6 = arith.constant 0 : i32
    %31 = arith.cmpi eq, %arg0, %c0_i32_6 : i32
    %c0_i32_7 = arith.constant 0 : i32
    %32 = vector.broadcast %c0_i32_7 : i32 to vector<8x1xi32>
    %33 = arith.cmpi eq, %24, %32 : vector<8x1xi32>
    %34 = vector.broadcast %31 : i1 to vector<8x1xi1>
    %35 = arith.andi %34, %33 : vector<8x1xi1>
    %36 = arith.cmpi ne, %11, %30 : vector<8x1xi32>
    %37 = arith.ori %35, %36 : vector<8x1xi1>
    %c0_i32_8 = arith.constant 0 : i32
    %38 = vector.broadcast %c0_i32_8 : i32 to vector<8x1xi32>
    %39 = arith.cmpi ne, %11, %38 : vector<8x1xi32>
    %40 = arith.andi %37, %39 : vector<8x1xi1>
    %c-1_i32 = arith.constant -1 : i32
    %41 = vector.broadcast %c-1_i32 : i32 to vector<8x1xi32>
    %42 = arith.select %40, %11, %41 : vector<8x1xi1>, vector<8x1xi32>
    %c0_9 = arith.constant 0 : index
    %c0_10 = arith.constant 0 : index
    %43 = vector.load %arg3[%c0_9, %c0_10] : memref<8x1xi32, #tpu.memory_space<vmem>>, vector<8x1xi32>
    tpu.vector_store %arg3[%c0_9, %c0_10], %42 {strides = array<i32>} : memref<8x1xi32, #tpu.memory_space<vmem>>, vector<8x1xi32>,
    return
  }
  func.func @transform_0(%arg0: i32) -> (i32, i32) {
    %c0_i32 = arith.constant 0 : i32
    %c0_i32_0 = arith.constant 0 : i32
    return %arg0, %c0_i32 : i32, i32
  }
  func.func @transform_1(%arg0: i32) -> (i32, i32) {
    %c1_i32 = arith.constant 1 : i32
    %0 = arith.muli %arg0, %c1_i32 : i32
    %c1_i32_0 = arith.constant 1 : i32
    %1 = arith.subi %0, %c1_i32_0 : i32
    %c0_i32 = arith.constant 0 : i32
    %2 = arith.maxsi %1, %c0_i32 : i32
    %c0_i32_1 = arith.constant 0 : i32
    %c0_i32_2 = arith.constant 0 : i32
    return %2, %c0_i32_1 : i32, i32
  }
  func.func @transform_2(%arg0: i32) -> (i32, i32) {
    %c0_i32 = arith.constant 0 : i32
    %c0_i32_0 = arith.constant 0 : i32
    return %arg0, %c0_i32 : i32, i32
  }
}

</mosaic_0001>

<bundles_post_ra>
// kernel: tpu_custom_call.1
= control target key start
LH: loop header
LB: loop body
LE: loop exit
PB: predicated region body
PF: predicated region fallthrough
CT: control target
= control target key end

     0   :  { %7 = vsyncpa [#allocation3], 0  ;;  %s220_s0 = inlined_call_operand.hbm [shape: f32[8,32], index: 0, kind: input, shape index: {}]   ;;  %s221_s1 = inlined_call_operand.hbm [shape: f32[8,32], index: 1, kind: input, shape index: {}]   ;;  %s222_s2 = inlined_call_operand.vmem [shape: s32[8,1], index: 2, kind: output, shape index: {}]  }
   0x1   :  { %8 = vsyncpa [#allocation5], 0  ;;  %s172_s9 = smov [#allocation2]   ;;  %s173_s11 = smov [#allocation4]  }
   0x2   :  { %s15_s10 = sshll.u32 %s172_s9, 4  ;;  %s30_s12 = sshll.u32 %s173_s11, 4  ;;  %s16_s10 = int_to_ptr.vmem [resolvable:$true] %s15_s10  ;;  %s31_s12 = int_to_ptr.vmem [resolvable:$true] %s30_s12 }
   0x3   :  { %s124_s15 = scalar_lea.hbm %s220_s0, 128 }
   0x4   :  { %p125_p0 = scmp.ne.s32.totalorder %s220_s0, %s124_s15  ;;  %p128_p1 = scmp.lt.u32.totalorder %s124_s15, %s220_s0 }
   0x6   :  { %p130_p2 = pnand %p128_p1, %p125_p0 }
   0x8   :  { %133 = shalt.err (!%p130_p2)
}
   0x9   :  { %s134_s20 = scalar_lea.vmem %s16_s10, 128  ;;  %p139_p4 = scmp.lt.s32.totalorder %s16_s10, %s16_s10 }
   0xa   :  { %p135_p3 = scmp.ne.s32.totalorder %s16_s10, %s134_s20  ;;  %p140_p5 = scmp.lt.s32.totalorder %s134_s20, %s134_s20 }
   0xc   :  { %p141_p6 = por %p140_p5, %p139_p4 }
   0xe   :  { %p142_p7 = pnand %p141_p6, %p135_p3 }
  0x10   :  { %145 = shalt.err (!%p142_p7)
}
  0x11   :  { %18 = dma.hbm_to_vmem [thread:$0]  %s220_s0, 128, %s16_s10, [#allocation3]  }
  0x12   :  { %s146_s25 = scalar_lea.hbm %s221_s1, 128 }
  0x13   :  { %p147_p8 = scmp.ne.s32.totalorder %s221_s1, %s146_s25  ;;  %p150_p9 = scmp.lt.u32.totalorder %s146_s25, %s221_s1 }
  0x15   :  { %p152_p10 = pnand %p150_p9, %p147_p8 }
  0x17   :  { %155 = shalt.err (!%p152_p10)
}
  0x18   :  { %s156_s30 = scalar_lea.vmem %s31_s12, 128  ;;  %p161_p12 = scmp.lt.s32.totalorder %s31_s12, %s31_s12 }
  0x19   :  { %p157_p11 = scmp.ne.s32.totalorder %s31_s12, %s156_s30  ;;  %p162_p13 = scmp.lt.s32.totalorder %s156_s30, %s156_s30 }
  0x1b   :  { %p163_p0 = por %p162_p13, %p161_p12 }
  0x1d   :  { %p164_p1 = pnand %p163_p0, %p157_p11 }
  0x1f   :  { %167 = shalt.err (!%p164_p1)
}
  0x20   :  { %33 = dma.hbm_to_vmem [thread:$0]  %s221_s1, 128, %s31_s12, [#allocation5]  }
  0x21   :  { %168 = dma.done.wait [#allocation3], 128  }
  0x22   :  { %169 = vsyncadd [#allocation3], 4294967168 }
  0x23   :  { %170 = dma.done.wait [#allocation5], 128  }
  0x24   :  { %171 = vsyncadd [#allocation5], 4294967168  ;;  %vm44_vm0 = vcmask 261120   ;;  %v43_v0 = vld [vmem:[#allocation2] sm:$0xff]  ;;  %v69_v1 = vld [vmem:[#allocation4 + $0x7] sm:$0x1]  ;;  %v48_v4 = vlaneseq }
  0x25   :  { %vm70_vm1 = vcmask 253952   ;;  %v45_v2 = vsel %vm44_vm0, %v43_v0, -inf  ;;  %vm51_vm2 = vcmp.ne.f32.partialorder %v43_v0, %v43_v0  ;;  %vm75_vm5 = vcmp.ne.f32.partialorder %v69_v1, %v69_v1 }
  0x26   :  { %46 = vmax.xlane.f32.xlu0 %v45_v2  ;;  %v71_v3 = vsel %vm70_vm1, %v69_v1, -inf  ;;  %v49_v5 = vand.u32 127, %v48_v4  ;;  %v94_v28 = vshrl.u32 %v48_v4, 7  ;;  %vm112_vm13 = vcmask 7168  }
  0x28   :  { %v99_v33 = vsub.s32 0, %v94_v28  ;;  %vm95_vm10 = vcmp.eq.s32.totalorder %v94_v28, 0 }
  0x2a   :  { %72 = vmax.xlane.f32.xlu0 %v71_v3 }
  0xb3   :  { %v47_v6 = vpop.xlane.xlu0 %46 }
  0xb4   :  { %vm50_vm3 = vcmp.ge.f32.partialorder %v43_v0, %v47_v6 }
  0xb5   :  { %vm52_vm4 = vmor %vm50_vm3, %vm51_vm2 }
  0xb6   :  { %v53_v7 = vsel %vm52_vm4, %v49_v5, 32 }
  0xb7   :  { %v73_v8 = vpop.xlane.xlu0 %72  ;;  %v54_v9 = vsel %vm44_vm0, %v53_v7, 2147483647 }
  0xb8   :  { %vm74_vm6 = vcmp.ge.f32.partialorder %v69_v1, %v73_v8  ;;  %v56_v10 = vshra.s32 %v54_v9, 16  ;;  %v55_v16 = vand.u32 65535, %v54_v9 }
  0xb9   :  { %vm76_vm7 = vmor %vm74_vm6, %vm75_vm5 }
  0xba   :  { %v77_v11 = vsel %vm76_vm7, %v49_v5, 32  ;;  %v58_v12 = vcvt.s32.f32 %v56_v10  ;;  %v57_v18 = vcvt.s32.f32 %v55_v16 }
  0xbb   :  { %v78_v13 = vsel %vm70_vm1, %v77_v11, 2147483647 }
  0xbc   :  { %59 = vmin.xlane.f32.xlu1 %v58_v12  ;;  %v80_v14 = vshra.s32 %v78_v13, 16  ;;  %v79_v19 = vand.u32 65535, %v78_v13 }
  0xbe   :  { %v82_v15 = vcvt.s32.f32 %v80_v14  ;;  %v81_v22 = vcvt.s32.f32 %v79_v19 }
  0xc0   :  { %83 = vmin.xlane.f32.xlu1 %v82_v15 }
 0x149   :  { %v60_v17 = vpop.xlane.xlu1 %59 }
 0x14a   :  { %vm61_vm8 = vcmp.eq.f32.partialorder %v58_v12, %v60_v17  ;;  %v66_v24 = vcvt.f32.s32 %v60_v17 }
 0x14b   :  { %v62_v20 = vsel %vm61_vm8, %v57_v18, inf }
 0x14c   :  { %63 = vmin.xlane.f32.xlu0 %v62_v20  ;;  %v67_v29 = vshll.u32 %v66_v24, 16 }
 0x14d   :  { %v84_v21 = vpop.xlane.xlu1 %83 }
 0x14e   :  { %vm85_vm9 = vcmp.eq.f32.partialorder %v82_v15, %v84_v21  ;;  %v90_v26 = vcvt.f32.s32 %v84_v21 }
 0x14f   :  { %v86_v23 = vsel %vm85_vm9, %v81_v22, inf }
 0x150   :  { %87 = vmin.xlane.f32.xlu1 %v86_v23  ;;  %v91_v31 = vshll.u32 %v90_v26, 16 }
 0x1d9   :  { %v64_v25 = vpop.xlane.xlu0 %63 }
 0x1da   :  { %v65_v27 = vcvt.f32.s32 %v64_v25 }
 0x1dc   :  { %v68_v32 = vadd.s32 %v67_v29, %v65_v27 }
 0x1dd   :  { %v88_v30 = vpop.xlane.xlu1 %87 }
 0x1de   :  { %v89_v34 = vcvt.f32.s32 %v88_v30  ;;  %v96_v36 = vrot.slane %v68_v32, 7  ;;  %vm109_vm12 = vcmp.ne.s32.totalorder %v68_v32, 0 }
 0x1e0   :  { %v92_v35 = vadd.s32 %v91_v31, %v89_v34 }
 0x1e2   :  { %v100_v37 = vrot.slane %v92_v35, %v99_v33 }
 0x1e4   :  { %v101_v38 = vsel %vm95_vm10, %v100_v37, %v96_v36 }
 0x1e5   :  { %vm107_vm11 = vcmp.ne.s32.totalorder %v68_v32, %v101_v38 }
 0x1e6   :  { %vm108_vm14 = vmor %vm95_vm10, %vm107_vm11 }
 0x1e7   :  { %vm110_vm15 = vmand %vm108_vm14, %vm109_vm12 }
 0x1e8   :  { %v111_v39 = vsel %vm110_vm15, %v68_v32, 4294967295 }
 0x1e9   :  { %113 = vst.msk [vmem:[%s222_s2] sm:$0xff] %vm112_vm13, %v111_v39 }
 0x1ea   :  { %118 = vsyncpa [#allocation3], 1 }
 0x1eb   :  { %119 = vsyncpa [#allocation5], 1 }

</bundles_post_ra>
